<compile_context>
chip_gen: v7x
topology: tpu7x:2x2x1
jax: 0.10.0
libtpu: 0.0.40
codegen_flags: <defaults>
</compile_context>

<pallas_src>
import functools

import jax
import jax.numpy as jnp
from jax.experimental import pallas as pl
from jax.experimental.pallas import tpu as pltpu


def _round_up(x: int, m: int) -> int:
    return ((x + m - 1) // m) * m


def _vmem_capacity_bytes(default: int = 64 * 1024 * 1024) -> int:
    """Best-effort VMEM capacity query; falls back to the v7x 64 MiB floor."""
    try:
        info = pltpu.get_tpu_info()
        cap = int(getattr(info, "vmem_capacity_bytes", default))
        return cap if cap > 0 else default
    except Exception:
        return default


# ---------------------------------------------------------------------------
# Kernel 1: argmax of the gumbel-perturbed prompt distribution, tiled over V.
#   scores_ref : (L, tile_v) f32 block of (fair_sent_dist + gumbel)
#   ids_ref    : (L, 1) i32 output (first index attaining the row max)
#   m_sc, a_sc : running max / arg accumulators (VMEM scratch)
# ---------------------------------------------------------------------------
def _prompt_argmax_kernel(scores_ref, ids_ref, m_sc, a_sc, *, v_total, tile_v):
    j = pl.program_id(0)

    @pl.when(j == 0)
    def _():
        m_sc[...] = jnp.full(m_sc.shape, -jnp.inf, dtype=m_sc.dtype)
        a_sc[...] = jnp.zeros(a_sc.shape, dtype=a_sc.dtype)

    s = scores_ref[...].astype(jnp.float32)                     # (L, tile_v)
    l, tv = s.shape
    col = jax.lax.broadcasted_iota(jnp.int32, (l, tv), 1) + j * tile_v
    s = jnp.where(col < v_total, s, -jnp.inf)                   # mask out-of-range columns
    tile_max = jnp.max(s, axis=1, keepdims=True)                # (L, 1)
    tile_arg = jnp.min(jnp.where(s == tile_max, col, v_total), axis=1, keepdims=True)
    better = tile_max > m_sc[...]                               # strict > keeps first-max tie rule
    a_sc[...] = jnp.where(better, tile_arg, a_sc[...])
    m_sc[...] = jnp.maximum(m_sc[...], tile_max)

    @pl.when(j == pl.num_programs(0) - 1)
    def _():
        ids_ref[...] = a_sc[...]


# ---------------------------------------------------------------------------
# Kernel 2a: embedding gather, VMEM-resident table fast path.
#   ids_ref   : (N_pad,) i32 in SMEM (scalar prefetch)
#   table_ref : (V, D) VMEM block (resident across the whole grid)
#   out_ref   : (TILE_N, D) VMEM output block for this grid step
# ---------------------------------------------------------------------------
def _gather_vmem_kernel(ids_ref, table_ref, out_ref, *, tile_n):
    base = pl.program_id(0) * tile_n

    def body(r, carry):
        row = ids_ref[base + r]                                  # scalar id from SMEM
        out_ref[pl.ds(r, 1), :] = table_ref[pl.ds(row, 1), :]    # one-row vector copy
        return carry

    jax.lax.fori_loop(0, tile_n, body, 0, unroll=8)


# ---------------------------------------------------------------------------
# Kernel 2b: embedding gather, HBM table + manual per-row DMAs.
#   ids_ref : (N_pad,) i32 in SMEM (scalar prefetch)
#   emb_hbm : (V, D) in HBM (memory_space=pl.ANY) -- never copied wholesale to VMEM
#   out_ref : (TILE_N, D) VMEM output block for this grid step
#   sems    : DMA semaphores, INFLIGHT-deep rotating window (static slot per lane)
# ---------------------------------------------------------------------------
def _gather_dma_kernel(ids_ref, emb_hbm, out_ref, sems, *, tile_n, inflight):
    base = pl.program_id(0) * tile_n
    n_win = tile_n // inflight            # tile_n is a multiple of inflight

    def start_copy(row, r, slot):
        pltpu.make_async_copy(
            emb_hbm.at[pl.ds(row, 1), :],
            out_ref.at[pl.ds(r, 1), :],
            sems.at[slot],
        ).start()

    def wait_copy(row, r, slot):
        # Rebuild the exact descriptor that was started on this slot (same src row,
        # same dst slice) so semaphore accounting always matches.
        pltpu.make_async_copy(
            emb_hbm.at[pl.ds(row, 1), :],
            out_ref.at[pl.ds(r, 1), :],
            sems.at[slot],
        ).wait()

    # Warm up: fill the in-flight window (rows 0 .. inflight-1), one slot each.
    for s in range(inflight):
        row = ids_ref[base + s]
        start_copy(row, s, s)

    # Steady state: whole windows.  Scalar ids are read BEFORE the wait so the
    # .wait() does not break SMEM sst->sld forwarding on the descriptor-issue path.
    def window(w, carry):
        for s in range(inflight):                      # static unroll -> static slots
            r_new = w * inflight + s
            r_old = r_new - inflight
            row_new = ids_ref[base + r_new]
            row_old = ids_ref[base + r_old]
            wait_copy(row_old, r_old, s)
            start_copy(row_new, r_new, s)
        return carry

    jax.lax.fori_loop(1, n_win, window, 0)

    # Drain: retire the last window.
    for s in range(inflight):
        r = tile_n - inflight + s
        row = ids_ref[base + r]
        wait_copy(row, r, s)


# ---------------------------------------------------------------------------
# Wrapper: forward pass of CategoricalEmb.
# ---------------------------------------------------------------------------
def categorical_emb_forward(input_ids, attn_mask, fair_sent_dist, emb_table,
                            gumbel_noise, *, tile_n=256, inflight=32,
                            table_vmem_budget=None, force_hbm_gather=False):
    B, S = input_ids.shape
    L, V = fair_sent_dist.shape
    V2, D = emb_table.shape
    assert V2 == V

    itemsize = jnp.dtype(emb_table.dtype).itemsize
    vmem_cap = _vmem_capacity_bytes()                        # 64 MiB fallback (v7x floor)
    safe_cap = max(vmem_cap - (8 << 20), 16 << 20)

    # ---- Kernel 1: prompt ids = argmax(logits + gumbel), tiled over V ----
    scores = (fair_sent_dist + gumbel_noise).astype(jnp.float32)   # (L, V), no padding
    max_tile_v = 2048
    tile_v = V if V <= max_tile_v else max_tile_v                  # multiple of 128 when tiled
    grid_v = pl.cdiv(V, tile_v)
    ax_limit = int(min(safe_cap, max(32 << 20, 6 * L * tile_v * 4)))

    prompt_ids = pl.pallas_call(
        functools.partial(_prompt_argmax_kernel, v_total=V, tile_v=tile_v),
        out_shape=jax.ShapeDtypeStruct((L, 1), jnp.int32),
        grid=(grid_v,),
        in_specs=[pl.BlockSpec((L, tile_v), lambda j: (0, j))],
        out_specs=pl.BlockSpec((L, 1), lambda j: (0, 0)),
        scratch_shapes=[pltpu.VMEM((L, 1), jnp.float32),
                        pltpu.VMEM((L, 1), jnp.int32)],
        compiler_params=pltpu.CompilerParams(
            dimension_semantics=("arbitrary",),
            vmem_limit_bytes=ax_limit),
    )(scores)[:, 0]                                                 # (L,) int32

    # ---- unified gather id list: L prompt rows + B*S token rows ----
    ids_all = jnp.concatenate([prompt_ids, input_ids.reshape(-1).astype(jnp.int32)])
    ids_all = jnp.clip(ids_all, 0, V - 1)        # guard against OOB reads / DMAs
    n_total = L + B * S

    # tile_n: multiple of inflight, no larger than needed (avoids wasted padded-tail rows).
    tile_n = max(inflight, min(tile_n, _round_up(n_total, inflight)))
    tile_n = _round_up(tile_n, inflight)
    n_pad = _round_up(n_total, tile_n)
    ids_all = jnp.pad(ids_all, (0, n_pad - n_total))
    grid_n = n_pad // tile_n

    table_bytes = V * D * itemsize
    if table_vmem_budget is None:
        table_vmem_budget = min(24 << 20, vmem_cap // 4)
    use_vmem_table = (not force_hbm_gather) and (table_bytes <= table_vmem_budget)

    if use_vmem_table:
        # ---- Kernel 2a: table resident in VMEM, per-row vector-load gather ----
        fast_limit = int(min(safe_cap,
                             max(32 << 20,
                                 2 * table_bytes + 4 * tile_n * D * itemsize + (2 << 20))))
        gathered = pl.pallas_call(
            functools.partial(_gather_vmem_kernel, tile_n=tile_n),
            out_shape=jax.ShapeDtypeStruct((n_pad, D), emb_table.dtype),
            grid_spec=pltpu.PrefetchScalarGridSpec(
                num_scalar_prefetch=1,                           # ids -> SMEM
                grid=(grid_n,),
                in_specs=[pl.BlockSpec((V, D), lambda i, ids: (0, 0))],  # table: resident
                out_specs=pl.BlockSpec((tile_n, D), lambda i, ids: (i, 0)),
            ),
            compiler_params=pltpu.CompilerParams(
                dimension_semantics=("parallel",),
                vmem_limit_bytes=fast_limit),
            cost_estimate=pl.CostEstimate(
                flops=0, transcendentals=0,
                bytes_accessed=table_bytes + 2 * n_pad * D * itemsize),
        )(ids_all, emb_table)
    else:
        # ---- Kernel 2b: table in HBM, per-row DMA gather with deep in-flight window ----
        dma_limit = int(min(safe_cap, 32 << 20))
        gathered = pl.pallas_call(
            functools.partial(_gather_dma_kernel, tile_n=tile_n, inflight=inflight),
            out_shape=jax.ShapeDtypeStruct((n_pad, D), emb_table.dtype),
            grid_spec=pltpu.PrefetchScalarGridSpec(
                num_scalar_prefetch=1,                           # ids -> SMEM
                grid=(grid_n,),
                in_specs=[pl.BlockSpec(memory_space=pl.ANY)],    # table stays in HBM
                out_specs=pl.BlockSpec((tile_n, D), lambda i, ids: (i, 0)),
                scratch_shapes=[pltpu.SemaphoreType.DMA((inflight,))],
            ),
            compiler_params=pltpu.CompilerParams(
                dimension_semantics=("parallel",),
                vmem_limit_bytes=dma_limit),
            cost_estimate=pl.CostEstimate(
                flops=0, transcendentals=0,
                bytes_accessed=2 * n_pad * D * itemsize),
        )(ids_all, emb_table)

    prompt_emb = gathered[:L]                                   # (L, D)
    tok_emb = gathered[L:L + B * S].reshape(B, S, D)            # (B, S, D)

    # ---- glue: broadcast prompt across batch, concat, build attention mask ----
    embeddings = jnp.concatenate(
        [jnp.broadcast_to(prompt_emb[None], (B, L, D)), tok_emb], axis=1)
    attention_mask = jnp.concatenate(
        [jnp.ones((B, L), dtype=attn_mask.dtype), attn_mask], axis=1)
    return embeddings, attention_mask


if __name__ == "__main__":
    # Small synthetic shapes consistent with the module:
    #   vocab V=64, hidden D=32, prompt length L=10 (hard-coded), batch B=2, seq S=8.
    B, S, V, D, L = 2, 8, 64, 32, 10

    key = jax.random.PRNGKey(0)
    k_emb, k_dist, k_gumbel, k_ids, k_mask = jax.random.split(key, 5)

    emb_table = jax.random.normal(k_emb, (V, D), dtype=jnp.float32)        # emb.weight (frozen)
    fair_sent_dist = jax.random.normal(k_dist, (L, V), dtype=jnp.float32)  # nn.Parameter
    gumbel_noise = jax.random.gumbel(k_gumbel, (L, V), dtype=jnp.float32)  # F.gumbel_softmax noise

    input_ids = jax.random.randint(k_ids, (B, S), 0, V, dtype=jnp.int32)
    attn_mask = jax.random.randint(k_mask, (B, S), 0, 2, dtype=jnp.int32)

    # reference in plain JAX
    ref_ids = jnp.argmax(fair_sent_dist + gumbel_noise, axis=1)            # (L,)
    ref_prompt = emb_table[ref_ids]                                        # (L, D)
    ref_emb = jnp.concatenate(
        [jnp.broadcast_to(ref_prompt[None], (B, L, D)), emb_table[input_ids]], axis=1)
    ref_mask = jnp.concatenate([jnp.ones((B, L), attn_mask.dtype), attn_mask], axis=1)

    # Fast path (table resident in VMEM — default for this small table).
    embeddings, attention_mask = categorical_emb_forward(
        input_ids, attn_mask, fair_sent_dist, emb_table, gumbel_noise)
    jax.block_until_ready((embeddings, attention_mask))
    assert embeddings.shape == (B, L + S, D)
    assert attention_mask.shape == (B, L + S)
    assert jnp.allclose(embeddings, ref_emb, atol=1e-5)
    assert jnp.array_equal(attention_mask, ref_mask)

    # HBM/DMA path (production path for LLM-size tables) — exercised explicitly.
    embeddings2, attention_mask2 = categorical_emb_forward(
        input_ids, attn_mask, fair_sent_dist, emb_table, gumbel_noise,
        force_hbm_gather=True)
    jax.block_until_ready((embeddings2, attention_mask2))
    assert jnp.allclose(embeddings2, ref_emb, atol=1e-5)
    assert jnp.array_equal(attention_mask2, ref_mask)

    # TODO(synk): the custom straight-through gumbel-softmax backward of the original module
    # has no forward-pass equivalent; only inference semantics are reproduced here.
    print("KERNEL_OK")
</pallas_src>

<mosaic_0001>
module attributes {stable_mosaic.version = 11 : i64} {
  func.func @_prompt_argmax_kernel(%arg0: i32, %arg1: memref<10x64xf32, #tpu.memory_space<vmem>>, %arg2: memref<10x1xi32, #tpu.memory_space<vmem>>, %arg3: memref<10x1xf32, #tpu.memory_space<vmem>>, %arg4: memref<10x1xi32, #tpu.memory_space<vmem>>) attributes {dimension_semantics = [#tpu.dimension_semantics<arbitrary>], iteration_bounds = array<i64: 1>, scalar_prefetch = 0 : i64, scratch_operands = 2 : i64, tpu.core_type = #tpu.core_type<tc>, window_params = [{transform_indices = @transform_0, window_bounds = array<i64: 10, 64>}, {pipeline_mode = #tpu.pipeline_mode<synchronous>, transform_indices = @transform_1, window_bounds = array<i64: 10, 1>}]} {
    %c0_i32 = arith.constant 0 : i32
    %0 = arith.cmpi eq, %arg0, %c0_i32 : i32
    %1 = arith.extui %0 : i1 to i32
    %c0_i32_0 = arith.constant 0 : i32
    %2 = arith.cmpi ne, %1, %c0_i32_0 : i32
    scf.if %2 {
      %cst_18 = arith.constant 0xFF800000 : f32
      %31 = vector.broadcast %cst_18 : f32 to vector<10x1xf32>
      %c0_19 = arith.constant 0 : index
      %c0_20 = arith.constant 0 : index
      %32 = vector.load %arg3[%c0_19, %c0_20] : memref<10x1xf32, #tpu.memory_space<vmem>>, vector<10x1xf32>
      tpu.vector_store %arg3[%c0_19, %c0_20], %31 {strides = array<i32>} : memref<10x1xf32, #tpu.memory_space<vmem>>, vector<10x1xf32>,
      %c0_i32_21 = arith.constant 0 : i32
      %33 = vector.broadcast %c0_i32_21 : i32 to vector<10x1xi32>
      %c0_22 = arith.constant 0 : index
      %c0_23 = arith.constant 0 : index
      %34 = vector.load %arg4[%c0_22, %c0_23] : memref<10x1xi32, #tpu.memory_space<vmem>>, vector<10x1xi32>
      tpu.vector_store %arg4[%c0_22, %c0_23], %33 {strides = array<i32>} : memref<10x1xi32, #tpu.memory_space<vmem>>, vector<10x1xi32>,
    } else {
    }
    %c0 = arith.constant 0 : index
    %c0_1 = arith.constant 0 : index
    %3 = vector.load %arg1[%c0, %c0_1] : memref<10x64xf32, #tpu.memory_space<vmem>>, vector<10x64xf32>
    %4 = tpu.iota {dimensions = array<i32: 1>} : vector<10x64xi32>
    %c64_i32 = arith.constant 64 : i32
    %5 = arith.muli %arg0, %c64_i32 : i32
    %6 = vector.broadcast %5 : i32 to vector<10x64xi32>
    %7 = arith.addi %4, %6 : vector<10x64xi32>
    %c64_i32_2 = arith.constant 64 : i32
    %8 = vector.broadcast %c64_i32_2 : i32 to vector<10x64xi32>
    %9 = arith.cmpi slt, %7, %8 : vector<10x64xi32>
    %cst = arith.constant 0xFF800000 : f32
    %10 = vector.broadcast %cst : f32 to vector<10x64xf32>
    %11 = arith.select %9, %3, %10 : vector<10x64xi1>, vector<10x64xf32>
    %cst_3 = arith.constant dense<0xFF800000> : vector<10xf32>
    %12 = vector.multi_reduction <maximumf>, %11, %cst_3 [1] : vector<10x64xf32> to vector<10xf32>
    %13 = vector.shape_cast %12 : vector<10xf32> to vector<10x1xf32>
    %14 = vector.broadcast %13 : vector<10x1xf32> to vector<10x64xf32>
    %15 = arith.cmpf oeq, %11, %14 : vector<10x64xf32>
    %c64_i32_4 = arith.constant 64 : i32
    %16 = vector.broadcast %c64_i32_4 : i32 to vector<10x64xi32>
    %17 = arith.select %15, %7, %16 : vector<10x64xi1>, vector<10x64xi32>
    %cst_5 = arith.constant dense<2147483647> : vector<10xi32>
    %18 = vector.multi_reduction <minsi>, %17, %cst_5 [1] : vector<10x64xi32> to vector<10xi32>
    %19 = vector.shape_cast %18 : vector<10xi32> to vector<10x1xi32>
    %c0_6 = arith.constant 0 : index
    %c0_7 = arith.constant 0 : index
    %20 = vector.load %arg3[%c0_6, %c0_7] : memref<10x1xf32, #tpu.memory_space<vmem>>, vector<10x1xf32>
    %21 = arith.cmpf ogt, %13, %20 : vector<10x1xf32>
    %c0_8 = arith.constant 0 : index
    %c0_9 = arith.constant 0 : index
    %22 = vector.load %arg4[%c0_8, %c0_9] : memref<10x1xi32, #tpu.memory_space<vmem>>, vector<10x1xi32>
    %23 = arith.select %21, %19, %22 : vector<10x1xi1>, vector<10x1xi32>
    %c0_10 = arith.constant 0 : index
    %c0_11 = arith.constant 0 : index
    %24 = vector.load %arg4[%c0_10, %c0_11] : memref<10x1xi32, #tpu.memory_space<vmem>>, vector<10x1xi32>
    tpu.vector_store %arg4[%c0_10, %c0_11], %23 {strides = array<i32>} : memref<10x1xi32, #tpu.memory_space<vmem>>, vector<10x1xi32>,
    %c0_12 = arith.constant 0 : index
    %c0_13 = arith.constant 0 : index
    %25 = vector.load %arg3[%c0_12, %c0_13] : memref<10x1xf32, #tpu.memory_space<vmem>>, vector<10x1xf32>
    %26 = arith.maximumf %25, %13 : vector<10x1xf32>
    %c0_14 = arith.constant 0 : index
    %c0_15 = arith.constant 0 : index
    %27 = vector.load %arg3[%c0_14, %c0_15] : memref<10x1xf32, #tpu.memory_space<vmem>>, vector<10x1xf32>
    tpu.vector_store %arg3[%c0_14, %c0_15], %26 {strides = array<i32>} : memref<10x1xf32, #tpu.memory_space<vmem>>, vector<10x1xf32>,
    %c0_i32_16 = arith.constant 0 : i32
    %28 = arith.cmpi eq, %arg0, %c0_i32_16 : i32
    %29 = arith.extui %28 : i1 to i32
    %c0_i32_17 = arith.constant 0 : i32
    %30 = arith.cmpi ne, %29, %c0_i32_17 : i32
    scf.if %30 {
      %c0_18 = arith.constant 0 : index
      %c0_19 = arith.constant 0 : index
      %31 = vector.load %arg4[%c0_18, %c0_19] : memref<10x1xi32, #tpu.memory_space<vmem>>, vector<10x1xi32>
      %c0_20 = arith.constant 0 : index
      %c0_21 = arith.constant 0 : index
      %32 = vector.load %arg2[%c0_20, %c0_21] : memref<10x1xi32, #tpu.memory_space<vmem>>, vector<10x1xi32>
      tpu.vector_store %arg2[%c0_20, %c0_21], %31 {strides = array<i32>} : memref<10x1xi32, #tpu.memory_space<vmem>>, vector<10x1xi32>,
    } else {
    }
    return
  }
  func.func @transform_0(%arg0: i32) -> (i32, i32) {
    %c0_i32 = arith.constant 0 : i32
    %c0_i32_0 = arith.constant 0 : i32
    return %c0_i32, %arg0 : i32, i32
  }
  func.func @transform_1(%arg0: i32) -> (i32, i32) {
    %c0_i32 = arith.constant 0 : i32
    %c0_i32_0 = arith.constant 0 : i32
    %c0_i32_1 = arith.constant 0 : i32
    return %c0_i32, %c0_i32_0 : i32, i32
  }
}

</mosaic_0001>

<bundles_post_ra>
// kernel: tpu_custom_call.1
= control target key start
LH: loop header
LB: loop body
LE: loop exit
PB: predicated region body
PF: predicated region fallthrough
CT: control target
= control target key end

     0   :  { %6 = vsyncpa [#allocation5], 0  ;;  %s143_s6 = smov [#allocation4]   ;;  %s191_s0 = inlined_call_operand.hbm [shape: f32[10,64], index: 0, kind: input, shape index: {}]   ;;  %s192_s1 = inlined_call_operand.vmem [shape: s32[10,1], index: 1, kind: output, shape index: {}]  }
   0x1   :  { %s12_s7 = sshll.u32 %s143_s6, 4  ;;  %s119_s10 = scalar_lea.hbm %s191_s0, 256  ;;  %s13_s7 = int_to_ptr.vmem [resolvable:$true] %s12_s7 }
   0x2   :  { %p120_p0 = scmp.ne.s32.totalorder %s191_s0, %s119_s10  ;;  %p123_p1 = scmp.lt.u32.totalorder %s119_s10, %s191_s0 }
   0x4   :  { %p125_p2 = pnand %p123_p1, %p120_p0 }
   0x6   :  { %128 = shalt.err (!%p125_p2)
}
   0x7   :  { %s129_s15 = scalar_lea.vmem %s13_s7, 256  ;;  %p134_p4 = scmp.lt.s32.totalorder %s13_s7, %s13_s7 }
   0x8   :  { %p130_p3 = scmp.ne.s32.totalorder %s13_s7, %s129_s15  ;;  %p135_p5 = scmp.lt.s32.totalorder %s129_s15, %s129_s15 }
   0xa   :  { %p136_p6 = por %p135_p5, %p134_p4 }
   0xc   :  { %p137_p7 = pnand %p136_p6, %p130_p3 }
   0xe   :  { %140 = shalt.err (!%p137_p7)
}
   0xf   :  { %s144_s16 = smov 128   ;;  %s145_s17 = smov 8  }
  0x10   :  { %18 = dma.hbm_to_vmem [thread:$0]  %s191_s0, 256, %s13_s7, [#allocation5], %s144_s16, %s144_s16, %s145_s17  }
  0x11   :  { %141 = dma.done.wait [#allocation5], 256  }
  0x12   :  { %142 = vsyncadd [#allocation5], 4294967040  ;;  %v34_v0 = vlaneseq  ;;  %vm26_vm0 = vcmask 7168   ;;  %v146_v2 = vmov -inf   ;;  %vm42_vm2 = vcmask 523264   ;;  %v32_v3 = vld [vmem:[#allocation4] sm:$0xff] }
  0x13   :  { %27 = vst.msk [vmem:[#allocation2] sm:$0xff] %vm26_vm0, %v146_v2  ;;  %v33_v4 = vld [vmem:[#allocation4 + $0x8] sm:$0x3]  ;;  %vm46_vm3 = vcmask 517120   ;;  %vm28_vm4 = vcmask 1024   ;;  %v147_v24 = vmov 0  }
  0x14   :  { %v35_v1 = vand.u32 127, %v34_v0  ;;  %29 = vst.msk [vmem:[#allocation2 + $0x8] sm:$0x3] %vm28_vm4, %v146_v2  ;;  %31 = vst.msk [vmem:[#allocation3 + $0x8] sm:$0x3] %vm28_vm4, %v147_v24 }
  0x15   :  { %30 = vst.msk [vmem:[#allocation3] sm:$0xff] %vm26_vm0, %v147_v24 }
  0x16   :  { %vm39_vm1 = vcmp.lt.s32.totalorder %v35_v1, 64 }
  0x17   :  { %v40_v5 = vsel %vm39_vm1, %v32_v3, -inf  ;;  %v41_v6 = vsel %vm39_vm1, %v33_v4, -inf }
  0x18   :  { %v43_v7 = vsel %vm42_vm2, %v40_v5, -inf  ;;  %v47_v8 = vsel %vm46_vm3, %v41_v6, -inf }
  0x19   :  { %44 = vmax.xlane.f32.xlu0 %v43_v7 }
  0x1a   :  { %v84_v9 = vld [vmem:[#allocation2] sm:$0xff] }
  0x1b   :  { %v97_v12 = vld [vmem:[#allocation2 + $0x8] sm:$0x3]  ;;  %v89_v44 = vld [vmem:[#allocation3 + $0x8] sm:$0x3] }
  0x1c   :  { %v85_v18 = vld [vmem:[#allocation2 + $0x8] sm:$0x3]  ;;  %v88_v38 = vld [vmem:[#allocation3] sm:$0xff] }
  0x1d   :  { %48 = vmax.xlane.f32.xlu0 %v47_v8 }
  0xa6   :  { %v45_v10 = vpop.xlane.xlu0 %44 }
  0xa7   :  { %vm50_vm5 = vcmp.eq.f32.partialorder %v40_v5, %v45_v10  ;;  %vm86_vm6 = vcmp.gt.f32.partialorder %v45_v10, %v84_v9  ;;  %v98_v11 = vmax.f32 %v84_v9, %v45_v10 }
  0xa8   :  { %v52_v13 = vsel %vm50_vm5, %v35_v1, 64 }
  0xa9   :  { %100 = vst.msk [vmem:[#allocation2] sm:$0xff] %vm26_vm0, %v98_v11  ;;  %v54_v14 = vsel %vm42_vm2, %v52_v13, 2147483647 }
  0xaa   :  { %v49_v15 = vpop.xlane.xlu0 %48  ;;  %v56_v16 = vshra.s32 %v54_v14, 16  ;;  %v55_v25 = vand.u32 65535, %v54_v14 }
  0xab   :  { %vm51_vm7 = vcmp.eq.f32.partialorder %v41_v6, %v49_v15  ;;  %v99_v17 = vmax.f32 %v97_v12, %v49_v15  ;;  %vm87_vm10 = vcmp.gt.f32.partialorder %v49_v15, %v85_v18 }
  0xac   :  { %v58_v19 = vcvt.s32.f32 %v56_v16  ;;  %v53_v20 = vsel %vm51_vm7, %v35_v1, 64  ;;  %v57_v27 = vcvt.s32.f32 %v55_v25 }
  0xad   :  { %101 = vst.msk [vmem:[#allocation2 + $0x8] sm:$0x3] %vm28_vm4, %v99_v17  ;;  %v69_v21 = vsel %vm46_vm3, %v53_v20, 2147483647 }
  0xae   :  { %59 = vmin.xlane.f32.xlu1 %v58_v19  ;;  %v71_v22 = vshra.s32 %v69_v21, 16  ;;  %v70_v28 = vand.u32 65535, %v69_v21 }
  0xb0   :  { %v73_v23 = vcvt.s32.f32 %v71_v22  ;;  %v72_v31 = vcvt.s32.f32 %v70_v28 }
  0xb2   :  { %74 = vmin.xlane.f32.xlu1 %v73_v23 }
 0x13b   :  { %v60_v26 = vpop.xlane.xlu1 %59 }
 0x13c   :  { %vm61_vm8 = vcmp.eq.f32.partialorder %v58_v19, %v60_v26  ;;  %v66_v33 = vcvt.f32.s32 %v60_v26 }
 0x13d   :  { %v62_v29 = vsel %vm61_vm8, %v57_v27, inf }
 0x13e   :  { %63 = vmin.xlane.f32.xlu0 %v62_v29  ;;  %v67_v35 = vshll.u32 %v66_v33, 16 }
 0x13f   :  { %v75_v30 = vpop.xlane.xlu1 %74 }
 0x140   :  { %vm76_vm9 = vcmp.eq.f32.partialorder %v73_v23, %v75_v30  ;;  %v81_v36 = vcvt.f32.s32 %v75_v30 }
 0x141   :  { %v77_v32 = vsel %vm76_vm9, %v72_v31, inf }
 0x142   :  { %78 = vmin.xlane.f32.xlu1 %v77_v32  ;;  %v82_v41 = vshll.u32 %v81_v36, 16 }
 0x1cb   :  { %v64_v34 = vpop.xlane.xlu0 %63 }
 0x1cc   :  { %v65_v37 = vcvt.f32.s32 %v64_v34 }
 0x1ce   :  { %v68_v39 = vadd.s32 %v67_v35, %v65_v37 }
 0x1cf   :  { %v79_v40 = vpop.xlane.xlu1 %78 }
 0x1d0   :  { %v90_v42 = vsel %vm86_vm6, %v68_v39, %v88_v38  ;;  %v80_v43 = vcvt.f32.s32 %v79_v40 }
 0x1d1   :  { %93 = vst.msk [vmem:[#allocation3] sm:$0xff] %vm26_vm0, %v90_v42 }
 0x1d2   :  { %v83_v45 = vadd.s32 %v82_v41, %v80_v43 }
 0x1d4   :  { %v91_v46 = vsel %vm87_vm10, %v83_v45, %v89_v44 }
 0x1d5   :  { %95 = vst.msk [vmem:[#allocation3 + $0x8] sm:$0x3] %vm28_vm4, %v91_v46 }
 0x1d8   :  { %v105_v47 = vld [vmem:[#allocation3] sm:$0xff] }
 0x1d9   :  { %107 = vst.msk [vmem:[%s192_s1] sm:$0xff] %vm26_vm0, %v105_v47 }
 0x1dc   :  { %v106_v48 = vld [vmem:[#allocation3 + $0x8] sm:$0x3] }
 0x1dd   :  { %108 = vst.msk [vmem:[%s192_s1 + $0x8] sm:$0x3] %vm28_vm4, %v106_v48 }
 0x1de   :  { %113 = vsyncpa [#allocation5], 1 }

</bundles_post_ra>
